<compile_context>
chip_gen: v7x
topology: tpu7x:2x2x1
jax: 0.10.0
libtpu: 0.0.40
codegen_flags: <defaults>
</compile_context>

<pallas_src>
import functools

import jax
import jax.numpy as jnp
from jax import lax
from jax.experimental import pallas as pl
from jax.experimental.pallas import tpu as pltpu


# ---------------------------------------------------------------------------
# helpers
# ---------------------------------------------------------------------------

def _vmem_budget_bytes() -> int:
    """Generation-aware VMEM limit (leave headroom for internal scratch)."""
    try:
        info = pltpu.get_tpu_info()
        cap = getattr(info, "vmem_capacity_bytes", None)
        if cap is None:
            cap = getattr(info, "vmem_bytes", None)
        if cap:
            return int(min(cap * 3 // 4, 112 * 1024 * 1024))
    except Exception:
        pass
    # Unknown generation: 48 MiB is safe even on v7x (64 MiB physical per TC).
    return 48 * 1024 * 1024


def _pick_n_tile(D: int, tile_n: int) -> int:
    """Largest multiple of 128 that divides D and is <= tile_n (or D itself)."""
    tile_n = min(tile_n, D)
    t = tile_n - tile_n % 128
    while t >= 128:
        if D % t == 0:
            return t
        t -= 128
    return D  # D < 128: lane dim equals the full array dim (allowed)


def _pick_b_tile(B: int, tile_b: int) -> int:
    """Largest divisor of B that is a multiple of 8 and <= tile_b."""
    if B <= tile_b:
        return B
    for t in range(tile_b, 7, -1):
        if B % t == 0 and t % 8 == 0:
            return t
    # TODO(synk): pad/mask the last batch tile for pathological B instead of
    # loading the whole batch in one tile.
    return B


# ---------------------------------------------------------------------------
# kernels
# ---------------------------------------------------------------------------

def _linear_kernel(x_ref, w_ref, p_ref, o_ref, *, tile_n, d_axis):
    # In-kernel bf16 cast (rides the free VPU slot) + f32 MXU accumulation.
    y = jnp.dot(x_ref[...].astype(jnp.bfloat16),
                w_ref[...].astype(jnp.bfloat16),
                preferred_element_type=jnp.float32)
    col = pl.multiple_of(pl.program_id(d_axis) * tile_n, tile_n)
    p = p_ref[:, pl.ds(col, tile_n)]          # fully resident packed params
    o_ref[...] = (y + p[0:1, :]).astype(o_ref.dtype)


def _linear_bn_kernel(x_ref, w_ref, p_ref, o_ref, *, tile_n, eps):
    y = jnp.dot(x_ref[...].astype(jnp.bfloat16),
                w_ref[...].astype(jnp.bfloat16),
                preferred_element_type=jnp.float32)
    # Linear bias intentionally skipped: a per-column constant added before
    # BatchNorm cancels exactly in the mean subtraction.
    mean = jnp.mean(y, axis=0, keepdims=True)
    cen = y - mean
    var = jnp.mean(cen * cen, axis=0, keepdims=True)      # two-pass variance
    inv = lax.rsqrt(var + eps)
    col = pl.multiple_of(pl.program_id(0) * tile_n, tile_n)
    p = p_ref[:, pl.ds(col, tile_n)]
    o_ref[...] = (cen * (inv * p[1:2, :]) + p[2:3, :]).astype(o_ref.dtype)


def _bn_pass1_kernel(x_ref, w_ref, y_ref, stats_ref):
    # grid = (D tiles ["parallel"], batch tiles ["arbitrary", innermost])
    @pl.when(pl.program_id(1) == 0)
    def _():
        stats_ref[...] = jnp.zeros_like(stats_ref)
    y = jnp.dot(x_ref[...].astype(jnp.bfloat16),
                w_ref[...].astype(jnp.bfloat16),
                preferred_element_type=jnp.float32)
    y_ref[...] = y
    sum_y = jnp.sum(y, axis=0, keepdims=True)
    sum_y2 = jnp.sum(y * y, axis=0, keepdims=True)
    stats_ref[...] = stats_ref[...] + jnp.concatenate([sum_y, sum_y2], axis=0)


def _bn_pass2_kernel(y_ref, stats_ref, p_ref, o_ref, *, tile_n, inv_b, eps):
    col = pl.multiple_of(pl.program_id(1) * tile_n, tile_n)
    s = stats_ref[:, pl.ds(col, tile_n)]
    mean = s[0:1, :] * inv_b
    # TODO(synk): one-pass variance (E[y^2]-mean^2) is cancellation-prone when
    # |mean| >> std; the VMEM-resident path above uses a two-pass variance.
    var = jnp.maximum(s[1:2, :] * inv_b - mean * mean, 0.0)
    inv = lax.rsqrt(var + eps)
    p = p_ref[:, pl.ds(col, tile_n)]
    o_ref[...] = ((y_ref[...] - mean) * (inv * p[1:2, :])
                  + p[2:3, :]).astype(o_ref.dtype)


# ---------------------------------------------------------------------------
# wrapper
# ---------------------------------------------------------------------------

def feat_bottleneck_forward(x, weight, bias, bn_gamma, bn_beta,
                            type_: str = "ori", eps: float = 1e-5,
                            tile_n: int = 512, tile_b: int = 512,
                            force_bn_fallback: bool = False):
    """feat_bottleneck forward.  x: [B, F]; weight: [F, D]; bias / bn_gamma /
    bn_beta: [D].  Returns [B, D]."""
    B, F = x.shape
    F2, D = weight.shape
    assert F == F2
    f32 = 4
    tn = _pick_n_tile(D, tile_n)
    vmem_limit = _vmem_budget_bytes()
    params = jnp.stack([bias, bn_gamma, bn_beta]).astype(jnp.float32)

    def cparams(dims):
        return pltpu.CompilerParams(dimension_semantics=dims,
                                    vmem_limit_bytes=vmem_limit)

    # ------------------------- type != 'bn' (Linear only) ------------------
    if type_ != "bn":
        tb = _pick_b_tile(B, tile_b)
        nb, nd = B // tb, D // tn
        x_bytes, w_bytes = B * F * f32, F * D * f32
        if x_bytes >= w_bytes:
            # x dominates the HBM traffic: fetch it once (batch axis outer).
            grid, d_axis = (nb, nd), 1
            x_spec = pl.BlockSpec((tb, F), lambda i, j: (i, 0))
            w_spec = pl.BlockSpec((F, tn), lambda i, j: (0, j))
            o_spec = pl.BlockSpec((tb, tn), lambda i, j: (i, j))
            p_spec = pl.BlockSpec((3, D), lambda i, j: (0, 0))
        else:
            # weight dominates: fetch it once (D axis outer).
            grid, d_axis = (nd, nb), 0
            x_spec = pl.BlockSpec((tb, F), lambda j, i: (i, 0))
            w_spec = pl.BlockSpec((F, tn), lambda j, i: (0, j))
            o_spec = pl.BlockSpec((tb, tn), lambda j, i: (i, j))
            p_spec = pl.BlockSpec((3, D), lambda j, i: (0, 0))
        return pl.pallas_call(
            functools.partial(_linear_kernel, tile_n=tn, d_axis=d_axis),
            out_shape=jax.ShapeDtypeStruct((B, D), x.dtype),
            grid_spec=pltpu.PrefetchScalarGridSpec(
                num_scalar_prefetch=0, grid=grid,
                in_specs=[x_spec, w_spec, p_spec], out_specs=o_spec),
            compiler_params=cparams(("parallel", "parallel")),
        )(x, weight, params)

    # ------------- type == 'bn': Linear + BatchNorm1d (batch stats) --------
    # Estimated VMEM need for the fused, full-batch-resident path.
    need = (B * F * (f32 + 2)                 # x (single buffer f32) + bf16 temp
            + F * tn * (2 * f32 + 2)          # weight double-buffer + bf16 temp
            + B * tn * (2 * f32 + 2 * f32)    # out double-buffer + y/cen temps
            + 2 * 3 * D * f32)                # packed params

    def _bn_resident():
        try:
            x_spec = pl.BlockSpec((B, F), lambda j: (0, 0),
                                  pipeline_mode=pl.Buffered(1))
        except (TypeError, AttributeError):
            x_spec = pl.BlockSpec((B, F), lambda j: (0, 0))
        # If x dominates, keep the D axis on one core ("arbitrary") so v7x
        # megacore does not duplicate the resident (B, F) block / its HBM read.
        dims = ("arbitrary",) if B * F > F * D else ("parallel",)
        return pl.pallas_call(
            functools.partial(_linear_bn_kernel, tile_n=tn, eps=eps),
            out_shape=jax.ShapeDtypeStruct((B, D), x.dtype),
            grid_spec=pltpu.PrefetchScalarGridSpec(
                num_scalar_prefetch=0, grid=(D // tn,),
                in_specs=[x_spec,
                          pl.BlockSpec((F, tn), lambda j: (0, j)),
                          pl.BlockSpec((3, D), lambda j: (0, 0))],
                out_specs=pl.BlockSpec((B, tn), lambda j: (0, j))),
            compiler_params=cparams(dims),
        )(x, weight, params)

    if (not force_bn_fallback) and need <= int(vmem_limit * 0.8):
        try:
            return _bn_resident()
        except Exception:
            pass  # fall back to the bounded-VMEM two-pass path below

    # Bounded-VMEM fallback: pass 1 (matmul + per-column sum / sum^2), then
    # pass 2 (normalize).  Batch stats stay exact over the whole batch.
    tb = _pick_b_tile(B, tile_b)
    nb, nd = B // tb, D // tn
    y, stats = pl.pallas_call(
        _bn_pass1_kernel,
        out_shape=(jax.ShapeDtypeStruct((B, D), jnp.float32),
                   jax.ShapeDtypeStruct((2, D), jnp.float32)),
        grid_spec=pltpu.PrefetchScalarGridSpec(
            num_scalar_prefetch=0, grid=(nd, nb),
            in_specs=[pl.BlockSpec((tb, F), lambda j, i: (i, 0)),
                      pl.BlockSpec((F, tn), lambda j, i: (0, j))],
            out_specs=[pl.BlockSpec((tb, tn), lambda j, i: (i, j)),
                       pl.BlockSpec((2, tn), lambda j, i: (0, j))]),
        compiler_params=cparams(("parallel", "arbitrary")),
    )(x, weight)

    return pl.pallas_call(
        functools.partial(_bn_pass2_kernel, tile_n=tn, inv_b=1.0 / B, eps=eps),
        out_shape=jax.ShapeDtypeStruct((B, D), x.dtype),
        grid_spec=pltpu.PrefetchScalarGridSpec(
            num_scalar_prefetch=0, grid=(nb, nd),
            in_specs=[pl.BlockSpec((tb, tn), lambda i, j: (i, j)),
                      pl.BlockSpec((2, D), lambda i, j: (0, 0)),
                      pl.BlockSpec((3, D), lambda i, j: (0, 0))],
            out_specs=pl.BlockSpec((tb, tn), lambda i, j: (i, j))),
        compiler_params=cparams(("parallel", "parallel")),
    )(y, stats, params)


# ---------------------------------------------------------------------------
# self-test
# ---------------------------------------------------------------------------

if __name__ == "__main__":
    key = jax.random.PRNGKey(0)
    kx, kw, kb, kg, kbe, kx2 = jax.random.split(key, 6)

    feature_dim, bottleneck_dim = 32, 256   # module default bottleneck_dim
    B = 8

    x = jax.random.normal(kx, (B, feature_dim), dtype=jnp.float32)
    # Linear: xavier_normal_ weight (init_weights); bias zero in the module,
    # but use a non-trivial bias/affine so both branches are exercised.
    std = (2.0 / (feature_dim + bottleneck_dim)) ** 0.5
    w = jax.random.normal(kw, (feature_dim, bottleneck_dim), jnp.float32) * std
    bias = 0.1 * jax.random.normal(kb, (bottleneck_dim,), jnp.float32)
    gamma = 1.0 + 0.02 * jax.random.normal(kg, (bottleneck_dim,), jnp.float32)
    beta = 0.1 * jax.random.normal(kbe, (bottleneck_dim,), jnp.float32)

    def ref_forward(xv, wv, b, g, be, type_):
        # Reference uses the same bf16-rounded matmul operands as the kernel.
        xr = xv.astype(jnp.bfloat16).astype(jnp.float32)
        wr = wv.astype(jnp.bfloat16).astype(jnp.float32)
        y = xr @ wr + b
        if type_ == "bn":
            m = jnp.mean(y, axis=0, keepdims=True)
            v = jnp.mean((y - m) ** 2, axis=0, keepdims=True)   # biased var
            y = (y - m) / jnp.sqrt(v + 1e-5) * g + be
        return y

    # default type='ori' -> just the Linear layer (weight-dominant ordering)
    y_ori = feat_bottleneck_forward(x, w, bias, gamma, beta, type_="ori")
    jax.block_until_ready(y_ori)
    r = ref_forward(x, w, bias, gamma, beta, "ori")
    assert jnp.allclose(y_ori, r, atol=2e-3, rtol=2e-3), \
        float(jnp.max(jnp.abs(y_ori - r)))

    # 'ori' again at a batch where x dominates (exercises the other ordering)
    B2 = 320
    x2 = jax.random.normal(kx2, (B2, feature_dim), dtype=jnp.float32)
    y_ori2 = feat_bottleneck_forward(x2, w, bias, gamma, beta, type_="ori")
    jax.block_until_ready(y_ori2)
    r2 = ref_forward(x2, w, bias, gamma, beta, "ori")
    assert jnp.allclose(y_ori2, r2, atol=2e-3, rtol=2e-3), \
        float(jnp.max(jnp.abs(y_ori2 - r2)))

    # 'bn' branch: fused Linear + BatchNorm1d (training-mode batch stats),
    # full-batch-resident path.
    ref_bn = ref_forward(x, w, bias, gamma, beta, "bn")
    y_bn = feat_bottleneck_forward(x, w, bias, gamma, beta, type_="bn")
    jax.block_until_ready(y_bn)
    assert jnp.allclose(y_bn, ref_bn, atol=2e-3, rtol=2e-3), \
        float(jnp.max(jnp.abs(y_bn - ref_bn)))

    # 'bn' branch: bounded-VMEM two-pass fallback (forced, to exercise it).
    y_bn2 = feat_bottleneck_forward(x, w, bias, gamma, beta, type_="bn",
                                    force_bn_fallback=True)
    jax.block_until_ready(y_bn2)
    assert jnp.allclose(y_bn2, ref_bn, atol=2e-3, rtol=2e-3), \
        float(jnp.max(jnp.abs(y_bn2 - ref_bn)))

    # TODO(synk): BatchNorm1d running_mean/running_var buffer updates (train-
    # mode side effects) are not emitted; only the normalized forward output.
    print("KERNEL_OK")
</pallas_src>

<mosaic_0001>
module attributes {stable_mosaic.version = 11 : i64} {
  func.func @_linear_kernel(%arg0: i32, %arg1: i32, %arg2: memref<8x32xf32, #tpu.memory_space<vmem>>, %arg3: memref<32x256xf32, #tpu.memory_space<vmem>>, %arg4: memref<3x256xf32, #tpu.memory_space<vmem>>, %arg5: memref<8x256xf32, #tpu.memory_space<vmem>>) attributes {dimension_semantics = [#tpu.dimension_semantics<parallel>, #tpu.dimension_semantics<parallel>], iteration_bounds = array<i64: 1, 1>, scalar_prefetch = 0 : i64, scratch_operands = 0 : i64, tpu.core_type = #tpu.core_type<tc>, window_params = [{transform_indices = @transform_0, window_bounds = array<i64: 8, 32>}, {transform_indices = @transform_1, window_bounds = array<i64: 32, 256>}, {pipeline_mode = #tpu.pipeline_mode<synchronous>, transform_indices = @transform_2, window_bounds = array<i64: 3, 256>}, {transform_indices = @transform_3, window_bounds = array<i64: 8, 256>}]} {
    %c0 = arith.constant 0 : index
    %c0_0 = arith.constant 0 : index
    %0 = vector.load %arg2[%c0, %c0_0] : memref<8x32xf32, #tpu.memory_space<vmem>>, vector<8x32xf32>
    %1 = arith.truncf %0 : vector<8x32xf32> to vector<8x32xbf16>
    %c0_1 = arith.constant 0 : index
    %c0_2 = arith.constant 0 : index
    %2 = vector.load %arg3[%c0_1, %c0_2] : memref<32x256xf32, #tpu.memory_space<vmem>>, vector<32x256xf32>
    %3 = arith.truncf %2 : vector<32x256xf32> to vector<32x256xbf16>
    %cst = arith.constant dense<0.000000e+00> : vector<8x256xf32>
    %4 = tpu.matmul %1, %3, %cst {dimension_numbers = #tpu.dot_dimension_numbers<[1], [0], [0], [1], [0, 0, 1, 1], [], []>} : vector<8x32xbf16>, vector<32x256xbf16>, vector<8x256xf32> -> vector<8x256xf32>
    %c256_i32 = arith.constant 256 : i32
    %5 = arith.muli %arg0, %c256_i32 : i32
    %6 = tpu.assume_multiple %5, 256 : i32
    %c0_3 = arith.constant 0 : index
    %7 = arith.index_cast %6 : i32 to index
    %8 = vector.load %arg4[%c0_3, %7] : memref<3x256xf32, #tpu.memory_space<vmem>>, vector<3x256xf32>
    %9 = vector.extract_strided_slice %8 {offsets = [0, 0], sizes = [1, 256], strides = [1, 1]} : vector<3x256xf32> to vector<1x256xf32>
    %10 = vector.broadcast %9 : vector<1x256xf32> to vector<8x256xf32>
    %11 = arith.addf %4, %10 : vector<8x256xf32>
    %c0_4 = arith.constant 0 : index
    %c0_5 = arith.constant 0 : index
    %12 = vector.load %arg5[%c0_4, %c0_5] : memref<8x256xf32, #tpu.memory_space<vmem>>, vector<8x256xf32>
    tpu.vector_store %arg5[%c0_4, %c0_5], %11 {strides = array<i32>} : memref<8x256xf32, #tpu.memory_space<vmem>>, vector<8x256xf32>,
    return
  }
  func.func @transform_0(%arg0: i32, %arg1: i32) -> (i32, i32) {
    %c0_i32 = arith.constant 0 : i32
    %c0_i32_0 = arith.constant 0 : i32
    return %arg1, %c0_i32 : i32, i32
  }
  func.func @transform_1(%arg0: i32, %arg1: i32) -> (i32, i32) {
    %c0_i32 = arith.constant 0 : i32
    %c0_i32_0 = arith.constant 0 : i32
    return %c0_i32, %arg0 : i32, i32
  }
  func.func @transform_2(%arg0: i32, %arg1: i32) -> (i32, i32) {
    %c0_i32 = arith.constant 0 : i32
    %c0_i32_0 = arith.constant 0 : i32
    %c0_i32_1 = arith.constant 0 : i32
    return %c0_i32, %c0_i32_0 : i32, i32
  }
  func.func @transform_3(%arg0: i32, %arg1: i32) -> (i32, i32) {
    %c0_i32 = arith.constant 0 : i32
    return %arg1, %arg0 : i32, i32
  }
}

</mosaic_0001>

<bundles_post_ra>
// kernel: tpu_custom_call.1
= control target key start
LH: loop header
LB: loop body
LE: loop exit
PB: predicated region body
PF: predicated region fallthrough
CT: control target
= control target key end

     0   :  { %8 = vsyncpa [#allocation3], 0  ;;  %s334_s0 = inlined_call_operand.hbm [shape: f32[8,32], index: 0, kind: input, shape index: {}]   ;;  %s335_s1 = inlined_call_operand.hbm [shape: f32[32,256], index: 1, kind: input, shape index: {}]   ;;  %s336_s2 = inlined_call_operand.hbm [shape: f32[3,256], index: 2, kind: input, shape index: {}]   ;;  %s337_s3 = inlined_call_operand.hbm [shape: f32[8,256], index: 3, kind: output, shape index: {}]  }
   0x1   :  { %9 = vsyncpa [#allocation6], 0 }
   0x2   :  { %10 = vsyncpa [#allocation4], 0  ;;  %s259_s12 = smov [#allocation5]   ;;  %s165_s16 = scalar_lea.hbm %s335_s1, 1024 }
   0x3   :  { %s26_s13 = sshll.u32 %s259_s12, 4  ;;  %p166_p0 = scmp.ne.s32.totalorder %s335_s1, %s165_s16  ;;  %s27_s13 = int_to_ptr.vmem [resolvable:$true] %s26_s13 }
   0x4   :  { %p169_p1 = scmp.lt.u32.totalorder %s165_s16, %s335_s1 }
   0x6   :  { %p171_p2 = pnand %p169_p1, %p166_p0 }
   0x8   :  { %174 = shalt.err (!%p171_p2)
}
   0x9   :  { %s175_s21 = scalar_lea.vmem %s27_s13, 1024  ;;  %p180_p4 = scmp.lt.s32.totalorder %s27_s13, %s27_s13 }
   0xa   :  { %p176_p3 = scmp.ne.s32.totalorder %s27_s13, %s175_s21  ;;  %p181_p5 = scmp.lt.s32.totalorder %s175_s21, %s175_s21 }
   0xc   :  { %p182_p6 = por %p181_p5, %p180_p4 }
   0xe   :  { %p183_p7 = pnand %p182_p6, %p176_p3 }
  0x10   :  { %186 = shalt.err (!%p183_p7)
}
  0x11   :  { %s260_s22 = smov 256   ;;  %s261_s23 = smov 16  }
  0x12   :  { %32 = dma.hbm_to_vmem [thread:$0]  %s335_s1, 1024, %s27_s13, [#allocation6], %s260_s22, %s260_s22, %s261_s23  }
  0x13   :  { %s262_s26 = smov [#allocation2]   ;;  %s263_s28 = smov [#allocation7]  }
  0x14   :  { %s17_s27 = sshll.u32 %s262_s26, 4  ;;  %s39_s29 = sshll.u32 %s263_s28, 4  ;;  %s18_s27 = int_to_ptr.vmem [resolvable:$true] %s17_s27  ;;  %s40_s29 = int_to_ptr.vmem [resolvable:$true] %s39_s29 }
  0x15   :  { %s187_s5 = scalar_lea.hbm %s334_s0, 128 }
  0x16   :  { %p188_p8 = scmp.ne.s32.totalorder %s334_s0, %s187_s5  ;;  %p191_p9 = scmp.lt.u32.totalorder %s187_s5, %s334_s0 }
  0x18   :  { %p193_p10 = pnand %p191_p9, %p188_p8 }
  0x1a   :  { %196 = shalt.err (!%p193_p10)
}
  0x1b   :  { %s197_s1 = scalar_lea.vmem %s18_s27, 128  ;;  %p202_p12 = scmp.lt.s32.totalorder %s18_s27, %s18_s27 }
  0x1c   :  { %p198_p11 = scmp.ne.s32.totalorder %s18_s27, %s197_s1  ;;  %p203_p13 = scmp.lt.s32.totalorder %s197_s1, %s197_s1 }
  0x1e   :  { %p204_p0 = por %p203_p13, %p202_p12 }
  0x20   :  { %p205_p1 = pnand %p204_p0, %p198_p11 }
  0x22   :  { %208 = shalt.err (!%p205_p1)
}
  0x23   :  { %20 = dma.hbm_to_vmem [thread:$0]  %s334_s0, 128, %s18_s27, [#allocation3]  }
  0x24   :  { %s209_s14 = scalar_lea.hbm %s336_s2, 128 }
  0x25   :  { %p210_p2 = scmp.ne.s32.totalorder %s336_s2, %s209_s14  ;;  %p213_p3 = scmp.lt.u32.totalorder %s209_s14, %s336_s2 }
  0x27   :  { %p215_p4 = pnand %p213_p3, %p210_p2 }
  0x29   :  { %218 = shalt.err (!%p215_p4)
}
  0x2a   :  { %s219_s19 = scalar_lea.vmem %s40_s29, 128  ;;  %p224_p6 = scmp.lt.s32.totalorder %s40_s29, %s40_s29 }
  0x2b   :  { %p220_p5 = scmp.ne.s32.totalorder %s40_s29, %s219_s19  ;;  %p225_p7 = scmp.lt.s32.totalorder %s219_s19, %s219_s19 }
  0x2d   :  { %p226_p8 = por %p225_p7, %p224_p6 }
  0x2f   :  { %p227_p9 = pnand %p226_p8, %p220_p5 }
  0x31   :  { %230 = shalt.err (!%p227_p9)
}
  0x32   :  { %42 = dma.hbm_to_vmem [thread:$0]  %s336_s2, 128, %s40_s29, [#allocation6]  }
  0x33   :  { %253 = dma.done.wait [#allocation3], 128  }
  0x34   :  { %254 = vsyncadd [#allocation3], 4294967168 }
  0x35   :  { %255 = dma.done.wait [#allocation6], 1152  }
  0x36   :  { %256 = vsyncadd [#allocation6], 4294966144  ;;  %v264_v0 = vmov 0   ;;  %v56_v1 = vld [vmem:[#allocation5 + $0x8] sm:$0xff]  ;;  %v58_v2 = vld [vmem:[#allocation5 + $0x18] sm:$0xff]  ;;  %vm92_vm0 = vcmask 261120   ;;  %v74_v15 = vlaneseq }
  0x37   :  { %128 = vmatprep.mubr.bf16.mxu0 %v264_v0  ;;  %v55_v3 = vld [vmem:[#allocation5] sm:$0xff]  ;;  %v64_v4 = vpack.c.bf16 %v58_v2, %v56_v1  ;;  %v57_v5 = vld [vmem:[#allocation5 + $0x10] sm:$0xff]  ;;  %v60_v6 = vld [vmem:[#allocation5 + $0x28] sm:$0xff]  ;;  %s265_s2 = smov [#allocation8]  }
  0x38   :  { %v62_v7 = vld [vmem:[#allocation5 + $0x38] sm:$0xff]  ;;  %v63_v8 = vpack.c.bf16 %v57_v5, %v55_v3  ;;  %v59_v10 = vld [vmem:[#allocation5 + $0x20] sm:$0xff]  ;;  %v61_v11 = vld [vmem:[#allocation5 + $0x30] sm:$0xff]  ;;  %v75_v16 = vshrl.u32 %v74_v15, 7  ;;  %s145_s21 = sshll.u32 %s265_s2, 4  ;;  %s146_s21 = int_to_ptr.vmem [resolvable:$true] %s145_s21 }
  0x39   :  { %v66_v9 = vpack.c.bf16 %v62_v7, %v60_v6  ;;  %96 = vmatprep.subr.bf16.mxu0 %v64_v4  ;;  %v65_v12 = vpack.c.bf16 %v61_v11, %v59_v10  ;;  %v53_v13 = vld [vmem:[#allocation2] sm:$0xff]  ;;  %v72_v18 = vld [vmem:[#allocation7] sm:$0x77]  ;;  %s231_s22 = scalar_lea.vmem %s146_s21, 256  ;;  %p236_p11 = scmp.lt.s32.totalorder %s146_s21, %s146_s21 }
  0x3a   :  { %97 = vmatpush1.bf16.msra.mxu0 %v63_v8  ;;  %v54_v14 = vpack.c.bf16 %v53_v13, %v53_v13  ;;  %v76_v17 = vsub.s32 0, %v75_v16  ;;  %v80_v19 = vsub.s32 4, %v75_v16  ;;  %p232_p10 = scmp.ne.s32.totalorder %s146_s21, %s231_s22  ;;  %p237_p12 = scmp.lt.s32.totalorder %s231_s22, %s231_s22 }
  0x3b   :  { %98 = vmatprep.subr.bf16.mxu0 %v66_v9 }
  0x3c   :  { %v77_v20 = vrot.slane %v72_v18, %v76_v17  ;;  %v81_v21 = vrot.slane %v72_v18, %v80_v19  ;;  %p238_p13 = por %p237_p12, %p236_p11 }
  0x3e   :  { %99 = vmatpush1.bf16.msra.mxu0 %v65_v12  ;;  %v87_v22 = vrot.slane %v77_v20, %v76_v17  ;;  %v91_v23 = vrot.slane %v81_v21, %v76_v17  ;;  %p239_p0 = pnand %p238_p13, %p232_p10 }
  0x41   :  { %157 = vmatmul.mubr.msk.bf16.vlgmr.msra.gmra.mrb[0].mxu0 %vm92_vm0, %v54_v14 }
 0x114   :  { %v130_v24 = vpop.f32.mrb[0].mxu0 }
 0x115   :  { %v131_v25 = vadd.f32 %v130_v24, %v87_v22  ;;  %v132_v26 = vpop.f32.mrb[1].mxu0 }
 0x116   :  { %v133_v27 = vadd.f32 %v132_v26, %v91_v23  ;;  %v134_v28 = vpop.f32.mrb[2].mxu0 }
 0x117   :  { %137 = vst [vmem:[#allocation8] sm:$0xff] %v131_v25  ;;  %v135_v29 = vpop.f32.mrb[3].mxu0 }
 0x118   :  { %138 = vst [vmem:[#allocation8 + $0x8] sm:$0xff] %v133_v27 }
 0x119   :  { %242 = shalt.err (!%p239_p0)
}
 0x11a   :  { %s243_s25 = scalar_lea.hbm %s337_s3, 256 }
 0x11b   :  { %p244_p1 = scmp.ne.s32.totalorder %s337_s3, %s243_s25  ;;  %p247_p2 = scmp.lt.u32.totalorder %s243_s25, %s337_s3 }
 0x11d   :  { %p249_p3 = pnand %p247_p2, %p244_p1 }
 0x11f   :  { %252 = shalt.err (!%p249_p3)
}
 0x120   :  { %148 = dma.vmem_to_hbm [thread:$0]  %s146_s21, 256, %s337_s3, [#allocation4]  }
 0x121   :  { %257 = dma.done.wait [#allocation4], 256  }
 0x122   :  { %258 = vsyncadd [#allocation4], 4294967040 }
 0x123   :  { %152 = vsyncpa [#allocation3], 1 }
 0x124   :  { %153 = vsyncpa [#allocation6], 1 }
 0x125   :  { %154 = vsyncpa [#allocation4], 1 }

</bundles_post_ra>
